<compile_context>
chip_gen: v7x
topology: tpu7x:2x2x1
jax: 0.10.0
libtpu: 0.0.40
codegen_flags: <defaults>
</compile_context>

<pallas_src>
import math

import numpy as np
import jax
import jax.numpy as jnp
from jax import lax
from jax.experimental import pallas as pl
from jax.experimental.pallas import tpu as pltpu


def _make_conv3x3_gelu_kernel(H, W):
    HW = H * W

    def kernel(x_ref, w_ref, b_ref, m_ref, o_ref, patches_ref):
        """Fused 3x3 conv (pad=1) + exact GELU for one batch element.

        x_ref:       (1, Cin, H*W)   flattened NCHW input (lane-dense)
        w_ref:       (Cout, 9*Cin)   weights, column = (dy*3+dx)*Cin + c
        b_ref:       (Cout, 1)       bias
        m_ref:       (9, H*W)        per-tap validity masks (implements pad=1)
        o_ref:       (1, Cout, H*W)  conv+GELU output (lane-dense)
        patches_ref: (9*Cin, H*W)    im2col scratch (VMEM)
        """
        Cin = x_ref.shape[1]
        xt = x_ref[0]                                      # (Cin, H*W)

        # ---- im2col built once into VMEM scratch (shifts on the XLU) ----
        for dy in range(3):
            for dx in range(3):
                t = dy * 3 + dx
                s = (dy - 1) * W + (dx - 1)                # flat lane shift
                if s == 0:
                    shifted = xt
                else:
                    shifted = pltpu.roll(xt, (-s) % HW, axis=1)
                # zero out taps that fall into the (virtual) 1-px padding
                slab = shifted * m_ref[t:t + 1, :]
                patches_ref[t * Cin:(t + 1) * Cin, :] = slab

        # ---- single MXU matmul, lane-dense (Cout, H*W) output ----
        z = jnp.dot(w_ref[...], patches_ref[...],
                    preferred_element_type=jnp.float32)
        z = z + b_ref[...].astype(jnp.float32)             # bias, lane-broadcast

        # ---- exact GELU (erf), full-lane VPU/EUP work ----
        z = 0.5 * z * (1.0 + lax.erf(z * jnp.float32(1.0 / math.sqrt(2.0))))

        o_ref[0] = z.astype(o_ref.dtype)

    return kernel


def conv3x3_gelu(x_nchw, weight, bias):
    """Fused Conv2d(3x3, stride=1, padding=1) + exact GELU.

    x_nchw: (N, Cin, H, W); weight: (Cout, Cin, 3, 3); bias: (Cout,).
    Returns (N, Cout, H, W).  Wrapper-side ops are free reshapes only."""
    N, Cin, H, W = x_nchw.shape
    Cout = weight.shape[0]
    HW = H * W

    xf = x_nchw.reshape(N, Cin, HW)                        # free (contiguous)

    # (Cout, Cin, 3, 3) -> (Cout, 9*Cin) with column = (dy*3+dx)*Cin + c
    w2 = jnp.transpose(weight, (0, 2, 3, 1)).reshape(Cout, 9 * Cin)
    b2 = bias.reshape(Cout, 1)

    # Per-tap validity masks: 1 where (h+dy-1, w+dx-1) lies inside the image.
    hh, ww = np.meshgrid(np.arange(H), np.arange(W), indexing="ij")
    rows = []
    for dy in range(3):
        for dx in range(3):
            oy, ox = dy - 1, dx - 1
            valid = ((hh + oy >= 0) & (hh + oy < H) &
                     (ww + ox >= 0) & (ww + ox < W))
            rows.append(valid.reshape(HW))
    masks = jnp.asarray(np.stack(rows), dtype=x_nchw.dtype)    # (9, H*W)

    out_flat = pl.pallas_call(
        _make_conv3x3_gelu_kernel(H, W),
        out_shape=jax.ShapeDtypeStruct((N, Cout, HW), x_nchw.dtype),
        grid=(N,),
        in_specs=[
            pl.BlockSpec((1, Cin, HW), lambda n: (n, 0, 0)),
            pl.BlockSpec((Cout, 9 * Cin), lambda n: (0, 0)),
            pl.BlockSpec((Cout, 1), lambda n: (0, 0)),
            pl.BlockSpec((9, HW), lambda n: (0, 0)),
        ],
        out_specs=pl.BlockSpec((1, Cout, HW), lambda n: (n, 0, 0)),
        scratch_shapes=[pltpu.VMEM((9 * Cin, HW), x_nchw.dtype)],
        compiler_params=pltpu.CompilerParams(
            dimension_semantics=("parallel",)),
    )(xf, w2, b2, masks)

    return out_flat.reshape(N, Cout, H, W)                 # free


def pixel_shuffle(x_nchw, r=2):
    """torch.nn.PixelShuffle semantics: (N, C*r^2, H, W) -> (N, C, H*r, W*r)."""
    N, C, H, W = x_nchw.shape
    Co = C // (r * r)
    y = x_nchw.reshape(N, Co, r, r, H, W)
    y = jnp.transpose(y, (0, 1, 4, 2, 5, 3))               # (N, Co, H, r, W, r)
    return y.reshape(N, Co, H * r, W * r)


def upsample_block_forward(x_nchw, weight, bias):
    y = conv3x3_gelu(x_nchw, weight, bias)   # Pallas hot path: conv + GELU fused
    # TODO(synk): fuse this stride-2 interleave into the kernel's output store.
    return pixel_shuffle(y, r=2)


def _reference(x_nchw, weight, bias):
    y = lax.conv_general_dilated(
        x_nchw.astype(jnp.float32), weight.astype(jnp.float32),
        window_strides=(1, 1), padding=((1, 1), (1, 1)),
        dimension_numbers=("NCHW", "OIHW", "NCHW"))
    y = y + bias.astype(jnp.float32)[None, :, None, None]
    y = jax.nn.gelu(y, approximate=False)
    return pixel_shuffle(y.astype(x_nchw.dtype), r=2)


if __name__ == "__main__":
    # Shapes consistent with upsample_block(in_channels=4, out_channels=8):
    # out_channels must be divisible by 4 for PixelShuffle(2).
    N, Cin, H, W = 2, 4, 16, 16
    Cout = 8

    key = jax.random.PRNGKey(0)
    kx, kw, kb = jax.random.split(key, 3)
    x = jax.random.normal(kx, (N, Cin, H, W), dtype=jnp.float32)
    weight = 0.1 * jax.random.normal(kw, (Cout, Cin, 3, 3), dtype=jnp.float32)
    bias = 0.1 * jax.random.normal(kb, (Cout,), dtype=jnp.float32)

    out = jax.block_until_ready(upsample_block_forward(x, weight, bias))
    assert out.shape == (N, Cout // 4, H * 2, W * 2), out.shape

    ref = jax.block_until_ready(_reference(x, weight, bias))
    assert jnp.allclose(out, ref, atol=2e-3, rtol=2e-3), \
        float(jnp.max(jnp.abs(out - ref)))

    print("KERNEL_OK")
</pallas_src>

<mosaic_0001>
module attributes {stable_mosaic.version = 11 : i64} {
  func.func @kernel(%arg0: i32, %arg1: memref<1x4x256xf32, #tpu.memory_space<vmem>>, %arg2: memref<8x36xf32, #tpu.memory_space<vmem>>, %arg3: memref<8x1xf32, #tpu.memory_space<vmem>>, %arg4: memref<9x256xf32, #tpu.memory_space<vmem>>, %arg5: memref<1x8x256xf32, #tpu.memory_space<vmem>>, %arg6: memref<36x256xf32, #tpu.memory_space<vmem>>) attributes {dimension_semantics = [#tpu.dimension_semantics<parallel>], iteration_bounds = array<i64: 2>, scalar_prefetch = 0 : i64, scratch_operands = 1 : i64, tpu.core_type = #tpu.core_type<tc>, window_params = [{transform_indices = @transform_0, window_bounds = array<i64: 1, 4, 256>}, {pipeline_mode = #tpu.pipeline_mode<synchronous>, transform_indices = @transform_1, window_bounds = array<i64: 8, 36>}, {pipeline_mode = #tpu.pipeline_mode<synchronous>, transform_indices = @transform_2, window_bounds = array<i64: 8, 1>}, {pipeline_mode = #tpu.pipeline_mode<synchronous>, transform_indices = @transform_3, window_bounds = array<i64: 9, 256>}, {transform_indices = @transform_4, window_bounds = array<i64: 1, 8, 256>}]} {
    %c0 = arith.constant 0 : index
    %c0_0 = arith.constant 0 : index
    %c0_1 = arith.constant 0 : index
    %0 = vector.load %arg1[%c0, %c0_0, %c0_1] : memref<1x4x256xf32, #tpu.memory_space<vmem>>, vector<1x4x256xf32>
    %1 = vector.shape_cast %0 : vector<1x4x256xf32> to vector<4x256xf32>
    %c17_i32 = arith.constant 17 : i32
    %2 = tpu.dynamic_rotate %1 by %c17_i32 dim 1 : vector<4x256xf32>, i32 -> vector<4x256xf32>
    %c0_2 = arith.constant 0 : index
    %c0_3 = arith.constant 0 : index
    %3 = vector.load %arg4[%c0_2, %c0_3] : memref<9x256xf32, #tpu.memory_space<vmem>>, vector<1x256xf32>
    %4 = vector.broadcast %3 : vector<1x256xf32> to vector<4x256xf32>
    %5 = arith.mulf %2, %4 : vector<4x256xf32>
    %c0_4 = arith.constant 0 : index
    %c0_5 = arith.constant 0 : index
    %6 = vector.load %arg6[%c0_4, %c0_5] : memref<36x256xf32, #tpu.memory_space<vmem>>, vector<4x256xf32>
    tpu.vector_store %arg6[%c0_4, %c0_5], %5 {strides = array<i32>} : memref<36x256xf32, #tpu.memory_space<vmem>>, vector<4x256xf32>,
    %c16_i32 = arith.constant 16 : i32
    %7 = tpu.dynamic_rotate %1 by %c16_i32 dim 1 : vector<4x256xf32>, i32 -> vector<4x256xf32>
    %c1 = arith.constant 1 : index
    %c0_6 = arith.constant 0 : index
    %8 = vector.load %arg4[%c1, %c0_6] : memref<9x256xf32, #tpu.memory_space<vmem>>, vector<1x256xf32>
    %9 = vector.broadcast %8 : vector<1x256xf32> to vector<4x256xf32>
    %10 = arith.mulf %7, %9 : vector<4x256xf32>
    %c4 = arith.constant 4 : index
    %c0_7 = arith.constant 0 : index
    %11 = vector.load %arg6[%c4, %c0_7] : memref<36x256xf32, #tpu.memory_space<vmem>>, vector<4x256xf32>
    tpu.vector_store %arg6[%c4, %c0_7], %10 {strides = array<i32>} : memref<36x256xf32, #tpu.memory_space<vmem>>, vector<4x256xf32>,
    %c15_i32 = arith.constant 15 : i32
    %12 = tpu.dynamic_rotate %1 by %c15_i32 dim 1 : vector<4x256xf32>, i32 -> vector<4x256xf32>
    %c2 = arith.constant 2 : index
    %c0_8 = arith.constant 0 : index
    %13 = vector.load %arg4[%c2, %c0_8] : memref<9x256xf32, #tpu.memory_space<vmem>>, vector<1x256xf32>
    %14 = vector.broadcast %13 : vector<1x256xf32> to vector<4x256xf32>
    %15 = arith.mulf %12, %14 : vector<4x256xf32>
    %c8 = arith.constant 8 : index
    %c0_9 = arith.constant 0 : index
    %16 = vector.load %arg6[%c8, %c0_9] : memref<36x256xf32, #tpu.memory_space<vmem>>, vector<4x256xf32>
    tpu.vector_store %arg6[%c8, %c0_9], %15 {strides = array<i32>} : memref<36x256xf32, #tpu.memory_space<vmem>>, vector<4x256xf32>,
    %c1_i32 = arith.constant 1 : i32
    %17 = tpu.dynamic_rotate %1 by %c1_i32 dim 1 : vector<4x256xf32>, i32 -> vector<4x256xf32>
    %c3 = arith.constant 3 : index
    %c0_10 = arith.constant 0 : index
    %18 = vector.load %arg4[%c3, %c0_10] : memref<9x256xf32, #tpu.memory_space<vmem>>, vector<1x256xf32>
    %19 = vector.broadcast %18 : vector<1x256xf32> to vector<4x256xf32>
    %20 = arith.mulf %17, %19 : vector<4x256xf32>
    %c12 = arith.constant 12 : index
    %c0_11 = arith.constant 0 : index
    %21 = vector.load %arg6[%c12, %c0_11] : memref<36x256xf32, #tpu.memory_space<vmem>>, vector<4x256xf32>
    tpu.vector_store %arg6[%c12, %c0_11], %20 {strides = array<i32>} : memref<36x256xf32, #tpu.memory_space<vmem>>, vector<4x256xf32>,
    %c4_12 = arith.constant 4 : index
    %c0_13 = arith.constant 0 : index
    %22 = vector.load %arg4[%c4_12, %c0_13] : memref<9x256xf32, #tpu.memory_space<vmem>>, vector<1x256xf32>
    %23 = vector.broadcast %22 : vector<1x256xf32> to vector<4x256xf32>
    %24 = arith.mulf %1, %23 : vector<4x256xf32>
    %c16 = arith.constant 16 : index
    %c0_14 = arith.constant 0 : index
    %25 = vector.load %arg6[%c16, %c0_14] : memref<36x256xf32, #tpu.memory_space<vmem>>, vector<4x256xf32>
    tpu.vector_store %arg6[%c16, %c0_14], %24 {strides = array<i32>} : memref<36x256xf32, #tpu.memory_space<vmem>>, vector<4x256xf32>,
    %c255_i32 = arith.constant 255 : i32
    %26 = tpu.dynamic_rotate %1 by %c255_i32 dim 1 : vector<4x256xf32>, i32 -> vector<4x256xf32>
    %c5 = arith.constant 5 : index
    %c0_15 = arith.constant 0 : index
    %27 = vector.load %arg4[%c5, %c0_15] : memref<9x256xf32, #tpu.memory_space<vmem>>, vector<1x256xf32>
    %28 = vector.broadcast %27 : vector<1x256xf32> to vector<4x256xf32>
    %29 = arith.mulf %26, %28 : vector<4x256xf32>
    %c20 = arith.constant 20 : index
    %c0_16 = arith.constant 0 : index
    %30 = vector.load %arg6[%c20, %c0_16] : memref<36x256xf32, #tpu.memory_space<vmem>>, vector<4x256xf32>
    tpu.vector_store %arg6[%c20, %c0_16], %29 {strides = array<i32>} : memref<36x256xf32, #tpu.memory_space<vmem>>, vector<4x256xf32>,
    %c241_i32 = arith.constant 241 : i32
    %31 = tpu.dynamic_rotate %1 by %c241_i32 dim 1 : vector<4x256xf32>, i32 -> vector<4x256xf32>
    %c6 = arith.constant 6 : index
    %c0_17 = arith.constant 0 : index
    %32 = vector.load %arg4[%c6, %c0_17] : memref<9x256xf32, #tpu.memory_space<vmem>>, vector<1x256xf32>
    %33 = vector.broadcast %32 : vector<1x256xf32> to vector<4x256xf32>
    %34 = arith.mulf %31, %33 : vector<4x256xf32>
    %c24 = arith.constant 24 : index
    %c0_18 = arith.constant 0 : index
    %35 = vector.load %arg6[%c24, %c0_18] : memref<36x256xf32, #tpu.memory_space<vmem>>, vector<4x256xf32>
    tpu.vector_store %arg6[%c24, %c0_18], %34 {strides = array<i32>} : memref<36x256xf32, #tpu.memory_space<vmem>>, vector<4x256xf32>,
    %c240_i32 = arith.constant 240 : i32
    %36 = tpu.dynamic_rotate %1 by %c240_i32 dim 1 : vector<4x256xf32>, i32 -> vector<4x256xf32>
    %c7 = arith.constant 7 : index
    %c0_19 = arith.constant 0 : index
    %37 = vector.load %arg4[%c7, %c0_19] : memref<9x256xf32, #tpu.memory_space<vmem>>, vector<1x256xf32>
    %38 = vector.broadcast %37 : vector<1x256xf32> to vector<4x256xf32>
    %39 = arith.mulf %36, %38 : vector<4x256xf32>
    %c28 = arith.constant 28 : index
    %c0_20 = arith.constant 0 : index
    %40 = vector.load %arg6[%c28, %c0_20] : memref<36x256xf32, #tpu.memory_space<vmem>>, vector<4x256xf32>
    tpu.vector_store %arg6[%c28, %c0_20], %39 {strides = array<i32>} : memref<36x256xf32, #tpu.memory_space<vmem>>, vector<4x256xf32>,
    %c239_i32 = arith.constant 239 : i32
    %41 = tpu.dynamic_rotate %1 by %c239_i32 dim 1 : vector<4x256xf32>, i32 -> vector<4x256xf32>
    %c8_21 = arith.constant 8 : index
    %c0_22 = arith.constant 0 : index
    %42 = vector.load %arg4[%c8_21, %c0_22] : memref<9x256xf32, #tpu.memory_space<vmem>>, vector<1x256xf32>
    %43 = vector.broadcast %42 : vector<1x256xf32> to vector<4x256xf32>
    %44 = arith.mulf %41, %43 : vector<4x256xf32>
    %c32 = arith.constant 32 : index
    %c0_23 = arith.constant 0 : index
    %45 = vector.load %arg6[%c32, %c0_23] : memref<36x256xf32, #tpu.memory_space<vmem>>, vector<4x256xf32>
    tpu.vector_store %arg6[%c32, %c0_23], %44 {strides = array<i32>} : memref<36x256xf32, #tpu.memory_space<vmem>>, vector<4x256xf32>,
    %c0_24 = arith.constant 0 : index
    %c0_25 = arith.constant 0 : index
    %46 = vector.load %arg2[%c0_24, %c0_25] : memref<8x36xf32, #tpu.memory_space<vmem>>, vector<8x36xf32>
    %c0_26 = arith.constant 0 : index
    %c0_27 = arith.constant 0 : index
    %47 = vector.load %arg6[%c0_26, %c0_27] : memref<36x256xf32, #tpu.memory_space<vmem>>, vector<36x256xf32>
    %cst = arith.constant dense<0.000000e+00> : vector<8x256xf32>
    %48 = tpu.matmul %46, %47, %cst {dimension_numbers = #tpu.dot_dimension_numbers<[1], [0], [0], [1], [0, 0, 1, 1], [], []>} : vector<8x36xf32>, vector<36x256xf32>, vector<8x256xf32> -> vector<8x256xf32>
    %c0_28 = arith.constant 0 : index
    %c0_29 = arith.constant 0 : index
    %49 = vector.load %arg3[%c0_28, %c0_29] : memref<8x1xf32, #tpu.memory_space<vmem>>, vector<8x1xf32>
    %50 = vector.broadcast %49 : vector<8x1xf32> to vector<8x256xf32>
    %51 = arith.addf %48, %50 : vector<8x256xf32>
    %cst_30 = arith.constant 5.000000e-01 : f32
    %52 = vector.broadcast %cst_30 : f32 to vector<8x256xf32>
    %53 = arith.mulf %52, %51 : vector<8x256xf32>
    %cst_31 = arith.constant 0.707106769 : f32
    %54 = vector.broadcast %cst_31 : f32 to vector<8x256xf32>
    %55 = arith.mulf %51, %54 : vector<8x256xf32>
    %56 = math.erf %55 : vector<8x256xf32>
    %cst_32 = arith.constant 1.000000e+00 : f32
    %57 = vector.broadcast %cst_32 : f32 to vector<8x256xf32>
    %58 = arith.addf %57, %56 : vector<8x256xf32>
    %59 = arith.mulf %53, %58 : vector<8x256xf32>
    %c0_33 = arith.constant 0 : index
    %c0_34 = arith.constant 0 : index
    %c0_35 = arith.constant 0 : index
    %60 = vector.load %arg5[%c0_33, %c0_34, %c0_35] : memref<1x8x256xf32, #tpu.memory_space<vmem>>, vector<1x8x256xf32>
    %61 = vector.shape_cast %60 : vector<1x8x256xf32> to vector<8x256xf32>
    %62 = vector.shape_cast %59 : vector<8x256xf32> to vector<1x8x256xf32>
    tpu.vector_store %arg5[%c0_33, %c0_34, %c0_35], %62 {strides = array<i32>} : memref<1x8x256xf32, #tpu.memory_space<vmem>>, vector<1x8x256xf32>,
    return
  }
  func.func @transform_0(%arg0: i32) -> (i32, i32, i32) {
    %c0_i32 = arith.constant 0 : i32
    %c0_i32_0 = arith.constant 0 : i32
    %c0_i32_1 = arith.constant 0 : i32
    return %arg0, %c0_i32, %c0_i32_0 : i32, i32, i32
  }
  func.func @transform_1(%arg0: i32) -> (i32, i32) {
    %c0_i32 = arith.constant 0 : i32
    %c0_i32_0 = arith.constant 0 : i32
    %c0_i32_1 = arith.constant 0 : i32
    return %c0_i32, %c0_i32_0 : i32, i32
  }
  func.func @transform_2(%arg0: i32) -> (i32, i32) {
    %c0_i32 = arith.constant 0 : i32
    %c0_i32_0 = arith.constant 0 : i32
    %c0_i32_1 = arith.constant 0 : i32
    return %c0_i32, %c0_i32_0 : i32, i32
  }
  func.func @transform_3(%arg0: i32) -> (i32, i32) {
    %c0_i32 = arith.constant 0 : i32
    %c0_i32_0 = arith.constant 0 : i32
    %c0_i32_1 = arith.constant 0 : i32
    return %c0_i32, %c0_i32_0 : i32, i32
  }
  func.func @transform_4(%arg0: i32) -> (i32, i32, i32) {
    %c0_i32 = arith.constant 0 : i32
    %c0_i32_0 = arith.constant 0 : i32
    %c0_i32_1 = arith.constant 0 : i32
    return %arg0, %c0_i32, %c0_i32_0 : i32, i32, i32
  }
}

</mosaic_0001>

<bundles_post_ra>
// kernel: tpu_custom_call.1
= control target key start
LH: loop header
LB: loop body
LE: loop exit
PB: predicated region body
PF: predicated region fallthrough
CT: control target
= control target key end

     0   :  { %9 = vsyncpa [#allocation4], 0  ;;  %s1200_s0 = inlined_call_operand.hbm [shape: f32[2,4,256], index: 0, kind: input, shape index: {}]   ;;  %s1201_s1 = inlined_call_operand.vmem [shape: f32[8,36], index: 1, kind: input, shape index: {}]   ;;  %s1202_s2 = inlined_call_operand.vmem [shape: f32[8,1], index: 2, kind: input, shape index: {}]   ;;  %s1203_s3 = inlined_call_operand.hbm [shape: f32[9,256], index: 3, kind: input, shape index: {}]   ;;  %s1204_s4 = inlined_call_operand.hbm [shape: f32[2,8,256], index: 4, kind: output, shape index: {}]  }
   0x1   :  { %11 = vsyncpa [#allocation4 + $0x1], 0 }
   0x2   :  { %12 = vsyncpa [#allocation7], 0 }
   0x3   :  { %13 = vsyncpa [#allocation5], 0 }
   0x4   :  { %15 = vsyncpa [#allocation5 + $0x1], 0  ;;  %s949_s15 = smov 0   ;;  %s951_s16 = smov 0  }
   0x5   :  { %s953_s17 = smov 0   ;;  %s955_s18 = smov 0  }
   0x6 LB: > { %s970_s19 = sadd.s32 4294967295, %s907_s18   ;;  %s675_s20 = sadd.s32 4294967294, %s907_s18   ;;  %s907_s18 = sphi %s955_s18, %s1224_s18   ;;  %s903_s17 = sphi %s953_s17, %s1223_s17   ;;  %s899_s16 = sphi %s951_s16, %s1222_s16   ;;  %s895_s15 = sphi %s949_s15, %s1221_s15  }
   0x7   : > { %p41_p0 = scmp.ne.s32.totalorder %s899_s16, %s895_s15  ;;  %p1205_p1 = scmp.eq.s32.totalorder %s970_s19, 0 }
   0x8   : > { %p134_p3 = scmp.eq.s32.totalorder %s675_s20, 1  ;;  %p676_p5 = scmp.ge.s32.totalorder %s907_s18, 1 }
   0x9   : > { %p979_p4 = por %p1205_p1, %p41_p0  ;;  %p141_p7 = scmp.lt.s32.totalorder %s907_s18, 3 }
   0xa   : > { %p984_p6 = por %p134_p3, %p41_p0  ;;  %s909_s24 = smov [#allocation6]  }
   0xb   : > { %s1208_s21 = scalar_select %p979_p4, 1, 0 }
   0xc   : > { %s1209_s22 = scalar_select %p984_p6, 1, 0 }
   0xd   : > { %p989_p8 = pnand %p676_p5, %p141_p7  ;;  %s159_s25 = sshll.u32 %s909_s24, 4  ;;  %s993_s25 = int_to_ptr.vmem [resolvable:$true] %s159_s25 }
   0xe   : > { %s1005_s27 = sadd.s32 1, %s907_s18   ;;  %s28_s28 = sadd.s32 1, %s903_s17 }
   0xf   : > { %s1210_s23 = scalar_select %p989_p8, 1, 0 }
  0x10   : > { %p712_p9 = pneg %p989_p8  ;;  %s25_s29 = ssub.s32 %s907_s18, %s1005_s27 }
  0x11   : > { %s779_s6 = scalar_lea.hbm %s1203_s3, 512 }
  0x12   : > { %p1000_p11 = pnand %p712_p9, %p1205_p1  ;;  %p780_p12 = scmp.ne.s32.totalorder %s1203_s3, %s779_s6 }
  0x13   : > { %p786_p5 = scmp.lt.u32.totalorder %s779_s6, %s1203_s3 }
  0x14   : > { %p781_p13 = pneg %p1000_p11 }
  0x16   : > { %p782_p0 = pnand %p781_p13, %p780_p12 }
  0x18   : > { %p783_p3 = pneg %p782_p0 }
  0x1a   : > { %p788_p7 = pnand %p786_p5, %p783_p3 }
  0x1c   : > { %791 = shalt.err (!%p788_p7)
}
  0x1d   : > { %s792_s11 = scalar_lea.vmem %s993_s25, 512  ;;  %p800_p2 = scmp.lt.s32.totalorder %s993_s25, %s993_s25 }
  0x1e   : > { %p793_p9 = scmp.ne.s32.totalorder %s993_s25, %s792_s11  ;;  %p801_p6 = scmp.lt.s32.totalorder %s792_s11, %s792_s11 }
  0x20   : > { %p795_p10 = pnand %p793_p9, %p781_p13  ;;  %p802_p4 = por %p801_p6, %p800_p2 }
  0x22   : > { %p796_p1 = pneg %p795_p10 }
  0x24   : > { %p803_p8 = pnand %p802_p4, %p796_p1 }
  0x26   : > { %806 = shalt.err (!%p803_p8)
}
  0x27   : > { %s910_s12 = smov 256   ;;  %s911_s13 = smov 16  }
  0x28   : > { %715 = dma.hbm_to_vmem [thread:$0]  (!%p1000_p11), %s1203_s3, 512, %s993_s25, [#allocation7], %s910_s12, %s910_s12, %s911_s13  }
  0x29   : > { %p26_p2 = scmp.eq.s32.totalorder %s25_s29, 0  ;;  %p35_p1 = scmp.ne.s32.totalorder %s903_s17, %s899_s16 }
  0x2a   : > { %p36_p4 = scmp.eq.s32.totalorder %s907_s18, 0  ;;  %p725_p6 = scmp.lt.s32.totalorder %s907_s18, 2 }
  0x2b   : > { %s1036_s24 = scalar_select %p26_p2, %s903_s17, %s28_s28  }
  0x2c   : > { %p37_p8 = por %p36_p4, %p35_p1  ;;  %p1212_p10 = scmp.eq.s32.totalorder %s970_s19, 1 }
  0x2d   : > { %s173_s5 = sand.u32 1, %s903_s17   ;;  %s694_s6 = sshll.u32 %s907_s18, 7 }
  0x2e   : > { %p1040_p12 = por %p1212_p10, %p35_p1  ;;  %s679_s7 = sshll.u32 %s173_s5, 3 }
  0x2f   : > { %s1049_s9 = scalar_lea.hbm %s1200_s0, %s694_s6  ;;  %s177_s25 = scalar_lea.vmem [#allocation3], %s679_s7 }
  0x30   : > { %s185_s28 = sshll.u32 %s177_s25, 4  ;;  %p1051_p11 = pnand %p725_p6, %p37_p8  ;;  %s1055_s28 = int_to_ptr.vmem [resolvable:$true] %s185_s28 }
  0x31   : > { %s174_s10 = scalar_lea.sflag [#allocation4], %s173_s5  ;;  %s807_s11 = scalar_lea.hbm %s1049_s9, 128 }
  0x32   : > { %p808_p13 = scmp.ne.s32.totalorder %s1049_s9, %s807_s11  ;;  %p809_p0 = pneg %p1051_p11 }
  0x33   : > { %s812_s14 = scalar_lea.hbm %s1200_s0, 256  ;;  %p813_p7 = scmp.lt.u32.totalorder %s1049_s9, %s1200_s0 }
  0x34   : > { %p810_p3 = pnand %p809_p0, %p808_p13  ;;  %p814_p9 = scmp.lt.u32.totalorder %s812_s14, %s807_s11 }
  0x35   : > { %p816_p1 = scmp.lt.u32.totalorder %s807_s11, %s1049_s9 }
  0x36   : > { %p811_p5 = pneg %p810_p3  ;;  %p815_p2 = por %p814_p9, %p813_p7 }
  0x38   : > { %p817_p4 = por %p816_p1, %p815_p2 }
  0x3a   : > { %p818_p6 = pnand %p817_p4, %p811_p5 }
  0x3c   : > { %821 = shalt.err (!%p818_p6)
}
  0x3d   : > { %s822_s5 = scalar_lea.vmem %s1055_s28, 128  ;;  %s912_s7 = smov [#allocation3]  }
  0x3e   : > { %p823_p8 = scmp.ne.s32.totalorder %s1055_s28, %s822_s5  ;;  %s827_s26 = sshll.u32 %s912_s7, 4  ;;  %s828_s26 = int_to_ptr.vmem [resolvable:$false] %s827_s26 }
  0x3f   : > { %s829_s8 = scalar_lea.vmem %s828_s26, 256  ;;  %p830_p3 = scmp.lt.s32.totalorder %s1055_s28, %s828_s26 }
  0x40   : > { %p825_p10 = pnand %p823_p8, %p809_p0  ;;  %p831_p7 = scmp.lt.s32.totalorder %s829_s8, %s822_s5 }
  0x42   : > { %p826_p13 = pneg %p825_p10  ;;  %p832_p9 = por %p831_p7, %p830_p3 }
  0x44   : > { %p833_p2 = pnand %p832_p9, %p826_p13 }
  0x46   : > { %836 = shalt.err (!%p833_p2)
}
  0x47   : > { %719 = dma.hbm_to_vmem [thread:$0]  (!%p1051_p11), %s1049_s9, 128, %s1055_s28, %s174_s10  }
  0x48   : > { %p1215_p5 = scmp.ne.s32.totalorder %s1210_s23, 0 }
  0x49   : > { %s1085_s25 = sand.u32 (!%p1215_p5), 1, %s899_s16   ;;  %p1216_p0 = scmp.ne.s32.totalorder (!%p1215_p5), %s1208_s21, 0 }
  0x4a   : > { %194 = sbr.rel (%p1215_p5) target bundleno = 490 (0x1ea), region = 36  ;;  %s683_s11 = sshll.u32 (!%p1215_p5), %s1085_s25, 3 }
  0x4b   : > { %s197_s12 = scalar_lea.sflag (!%p1215_p5), [#allocation4], %s1085_s25  ;;  %s200_s13 = scalar_lea.vmem (!%p1215_p5), [#allocation3], %s683_s11 }
  0x51   : > { %882 = dma.done.wait (%p1216_p0), %s197_s12, 128  }
  0x52   : > { %884 = vsyncadd (%p1216_p0), %s197_s12, 4294967168  ;;  %p1217_p1 = scmp.eq.s32.totalorder %s970_s19, 0 }
  0x54   : > { %886 = dma.done.wait (%p1217_p1), [#allocation7], 512   ;;  %p1218_p11 = pmov %p1217_p1 }
  0x55   : > { %v237_v0 = vlaneseq  ;;  %v229_v2 = vld [vmem:[%s200_s13] sm:$0xff]  ;;  %s913_s23 = smov 1   ;;  %s914_s9 = smov 16   ;;  %v343_v6 = vld [vmem:[#allocation6 + $0x4] ss:$8 sm:$0x3] }
  0x56   : > { %888 = vsyncadd (%p1218_p11), [#allocation7], 4294966784  ;;  %312 = vrot.lane.b32.xlu1 %v229_v2, %s913_s23  ;;  %258 = vrot.lane.b32.xlu0 %v229_v2, %s914_s9  ;;  %v231_v3 = vcombine.high %v229_v2, %v229_v2  ;;  %s915_s21 = smov 17   ;;  %s916_s28 = smov 15   ;;  %v921_v12 = vmov 0.0   ;;  %v480_v13 = vld [vmem:[%s1202_s2] sm:$0xff] }
  0x57   : > { %v245_v1 = vshrl.u32 %v237_v0, 7  ;;  %s917_s29 = smov 127   ;;  %s918_s10 = smov 112   ;;  %561 = vmatprep.mubr.f32.mxu0 %v921_v12  ;;  %v922_v14 = vmov 0   ;;  %v1106_v15 = vand.u32 127, %v237_v0  ;;  %vm490_vm8 = vcmask 1043456  }
  0x58   : > { %s919_s14 = smov 113   ;;  %s920_s20 = smov 111   ;;  %773 = vset.pattern.permute.xlu0 %v922_v14  ;;  %v320_v16 = vld [vmem:[#allocation6 + $0x3] ss:$8 sm:$0x3]  ;;  %vm486_vm9 = vcmask 293888  }
  0x59   : > { %v1097_v4 = vsub.s32 0, %v245_v1  ;;  %v1099_v5 = vsub.s32 1, %v245_v1  ;;  %vm316_vm0 = vcmp.lt.s32.totalorder %v1106_v15, 1  ;;  %v242_v21 = vld [vmem:[#allocation6] ss:$8 sm:$0x3] }
  0x5a   : > { %233 = vrot.lane.b32.xlu0 %v229_v2, %s915_s21  ;;  %314 = vrot.lane.b32.xlu1 %v231_v3, %s913_s23  ;;  %v266_v22 = vld [vmem:[#allocation6 + $0x1] ss:$8 sm:$0x3]  ;;  %vm239_vm1 = vcmp.lt.s32.totalorder %v1106_v15, 17  ;;  %vm262_vm2 = vcmp.lt.s32.totalorder %v1106_v15, 16  ;;  %vm292_vm3 = vcmp.lt.s32.totalorder %v1106_v15, 15 }
  0x5b   : > { %v348_v7 = vrot.slane %v343_v6, %v1097_v4  ;;  %v352_v8 = vrot.slane %v343_v6, %v1099_v5  ;;  %v325_v19 = vrot.slane %v320_v16, %v1097_v4  ;;  %v329_v20 = vrot.slane %v320_v16, %v1099_v5  ;;  %v296_v29 = vld [vmem:[#allocation6 + $0x2] ss:$8 sm:$0x3]  ;;  %v369_v48 = vld [vmem:[#allocation6 + $0x5] ss:$8 sm:$0x3] }
  0x5c   : > { %v247_v27 = vrot.slane %v242_v21, %v1097_v4  ;;  %v251_v28 = vrot.slane %v242_v21, %v1099_v5  ;;  %v271_v32 = vrot.slane %v266_v22, %v1097_v4  ;;  %v275_v33 = vrot.slane %v266_v22, %v1099_v5  ;;  %v423_v59 = vld [vmem:[#allocation6 + $0x7] ss:$8 sm:$0x3]  ;;  %v399_v6 = vld [vmem:[#allocation6 + $0x6] ss:$8 sm:$0x3] }
  0x5d   : > { %v353_v9 = vcombine.low %v348_v7, %v352_v8  ;;  %v301_v38 = vrot.slane %v296_v29, %v1097_v4  ;;  %v305_v39 = vrot.slane %v296_v29, %v1099_v5  ;;  %vm365_vm4 = vcmp.lt.s32.totalorder %v1106_v15, 127  ;;  %s685_s8 = sshll.u32 %s1085_s25, 4  ;;  %s695_s11 = sshll.u32 %s970_s19, 8 }
  0x5e   : > { %235 = vrot.lane.b32.xlu1 %v231_v3, %s915_s21  ;;  %260 = vrot.lane.b32.xlu0 %v231_v3, %s914_s9  ;;  %v374_v57 = vrot.slane %v369_v48, %v1097_v4  ;;  %v378_v58 = vrot.slane %v369_v48, %v1099_v5  ;;  %vm419_vm5 = vcmp.lt.s32.totalorder %v1106_v15, 112  ;;  %vm395_vm6 = vcmp.lt.s32.totalorder %v1106_v15, 113  ;;  %s228_s12 = scalar_lea.vmem [#allocation8], %s685_s8  ;;  %s1156_s21 = scalar_lea.hbm %s1204_s4, %s695_s11 }
  0x5f   : > { %v355_v10 = vmul.f32 %v353_v9, %v229_v2  ;;  %v404_v16 = vrot.slane %v399_v6, %v1097_v4  ;;  %vm449_vm7 = vcmp.lt.s32.totalorder %v1106_v15, 111  ;;  %s595_s13 = sshll.u32 %s228_s12, 4  ;;  %s1158_s13 = int_to_ptr.vmem [resolvable:$true] %s595_s13 }
  0x60   : > { %s837_s19 = scalar_lea.vmem %s1158_s13, 256 }
  0x61   : > { %v357_v11 = vcombine.high %v355_v10, %v355_v10  ;;  %359 = vst [vmem:[#allocation2 + $0x20] sm:$0xf] %v355_v10  ;;  %p838_p4 = scmp.ne.s32.totalorder %s1158_s13, %s837_s19 }
  0x62   : > { %290 = vrot.lane.b32.xlu1 %v231_v3, %s916_s28  ;;  %288 = vrot.lane.b32.xlu0 %v229_v2, %s916_s28  ;;  %s581_s28 = scalar_lea.sflag [#allocation5], %s1085_s25 }
  0x63   : > { %360 = vst [vmem:[#allocation2 + $0x28] sm:$0xf] %v357_v11  ;;  %p839_p6 = pnand %p838_p4, %p1040_p12 }
  0x65   : > { %p840_p8 = pneg %p839_p6 }
  0x66   : > { %363 = vrot.lane.b32.xlu1 %v231_v3, %s917_s29  ;;  %361 = vrot.lane.b32.xlu0 %v229_v2, %s917_s29  ;;  %s923_s29 = smov [#allocation8]  }
  0x6a   : > { %417 = vrot.lane.b32.xlu1 %v231_v3, %s918_s10  ;;  %415 = vrot.lane.b32.xlu0 %v229_v2, %s918_s10  ;;  %s841_s10 = sshll.u32 %s923_s29, 4  ;;  %s842_s10 = int_to_ptr.vmem [resolvable:$false] %s841_s10 }
  0x6b   : > { %p844_p10 = scmp.lt.s32.totalorder %s1158_s13, %s842_s10 }
  0x6e   : > { %393 = vrot.lane.b32.xlu1 %v231_v3, %s919_s14  ;;  %391 = vrot.lane.b32.xlu0 %v229_v2, %s919_s14  ;;  %s843_s14 = scalar_lea.vmem %s842_s10, 512 }
  0x6f   : > { %p845_p13 = scmp.lt.s32.totalorder %s843_s14, %s837_s19 }
  0x71   : > { %p846_p3 = por %p845_p13, %p844_p10 }
  0x72   : > { %447 = vrot.lane.b32.xlu1 %v231_v3, %s920_s20  ;;  %445 = vrot.lane.b32.xlu0 %v229_v2, %s920_s20  ;;  %v428_v2 = vrot.slane %v423_v59, %v1097_v4  ;;  %v432_v3 = vrot.slane %v423_v59, %v1099_v5 }
  0x73   : > { %p847_p7 = pnand %p846_p3, %p840_p8 }
  0x76   : > { %483 = vperm.xlu0 %773, %v480_v13  }
  0xc8   : > { %v313_v17 = vpop.permute.xlu1 %312  ;;  %v259_v18 = vpop.permute.xlu0 %258 }
  0xcc   : > { %v234_v23 = vpop.permute.xlu0 %233  ;;  %v315_v24 = vpop.permute.xlu1 %314 }
  0xcd   : > { %v317_v25 = vsel %vm316_vm0, %v313_v17, %v315_v24  ;;  %v318_v26 = vsel %vm316_vm0, %v315_v24, %v313_v17  ;;  %v408_v17 = vrot.slane %v399_v6, %v1099_v5 }
  0xce   : > { %v332_v30 = vmul.f32 %v325_v19, %v318_v26  ;;  %v333_v31 = vmul.f32 %v329_v20, %v317_v25  ;;  %v453_v19 = vld [vmem:[#allocation6 + $0x10] ss:$8 sm:$0x3] }
  0xd0   : > { %v336_v34 = vrot.slane %v332_v30, 4  ;;  %v337_v35 = vrot.slane %v333_v31, 4  ;;  %v236_v36 = vpop.permute.xlu1 %235  ;;  %v261_v37 = vpop.permute.xlu0 %260 }
  0xd1   : > { %v240_v40 = vsel %vm239_vm1, %v234_v23, %v236_v36  ;;  %v241_v41 = vsel %vm239_vm1, %v236_v36, %v234_v23  ;;  %v263_v42 = vsel %vm262_vm2, %v259_v18, %v261_v37  ;;  %v264_v43 = vsel %vm262_vm2, %v261_v37, %v259_v18 }
  0xd2   : > { %340 = vst [vmem:[#allocation2 + $0x10] sm:$0xf0] %v336_v34  ;;  %341 = vst [vmem:[#allocation2 + $0x18] sm:$0xf0] %v337_v35  ;;  %v254_v44 = vmul.f32 %v247_v27, %v241_v41  ;;  %v255_v45 = vmul.f32 %v251_v28, %v240_v40  ;;  %v278_v46 = vmul.f32 %v271_v32, %v264_v43 }
  0xd3   : > { %v279_v47 = vmul.f32 %v275_v33, %v263_v42  ;;  %v458_v33 = vrot.slane %v453_v19, %v1097_v4  ;;  %v462_v34 = vrot.slane %v453_v19, %v1099_v5 }
  0xd4   : > { %256 = vst [vmem:[#allocation2] sm:$0xf] %v254_v44  ;;  %257 = vst [vmem:[#allocation2 + $0x8] sm:$0xf] %v255_v45  ;;  %v282_v49 = vrot.slane %v278_v46, 4  ;;  %v291_v51 = vpop.permute.xlu1 %290  ;;  %v289_v52 = vpop.permute.xlu0 %288  ;;  %v469_v46 = vld [vmem:[%s1201_s1] sm:$0xff] }
  0xd5   : > { %v283_v50 = vrot.slane %v279_v47, 4  ;;  %v293_v53 = vsel %vm292_vm3, %v289_v52, %v291_v51  ;;  %v294_v54 = vsel %vm292_vm3, %v291_v51, %v289_v52 }
  0xd6   : > { %286 = vst [vmem:[#allocation2] sm:$0xf0] %v282_v49  ;;  %v308_v55 = vmul.f32 %v301_v38, %v294_v54  ;;  %v309_v56 = vmul.f32 %v305_v39, %v293_v53 }
  0xd7   : > { %287 = vst [vmem:[#allocation2 + $0x8] sm:$0xf0] %v283_v50 }
  0xd8   : > { %310 = vst [vmem:[#allocation2 + $0x10] sm:$0xf] %v308_v55  ;;  %311 = vst [vmem:[#allocation2 + $0x18] sm:$0xf] %v309_v56  ;;  %v364_v60 = vpop.permute.xlu1 %363  ;;  %v362_v61 = vpop.permute.xlu0 %361 }
  0xd9   : > { %v366_v62 = vsel %vm365_vm4, %v362_v61, %v364_v60  ;;  %v367_v63 = vsel %vm365_vm4, %v364_v60, %v362_v61 }
  0xda   : > { %v381_v0 = vmul.f32 %v374_v57, %v366_v62  ;;  %v382_v1 = vmul.f32 %v378_v58, %v367_v63 }
  0xdc   : > { %v385_v7 = vrot.slane %v381_v0, 4  ;;  %v386_v8 = vrot.slane %v382_v1, 4  ;;  %v418_v9 = vpop.permute.xlu1 %417  ;;  %v416_v10 = vpop.permute.xlu0 %415 }
  0xdd   : > { %v420_v11 = vsel %vm419_vm5, %v416_v10, %v418_v9  ;;  %v421_v12 = vsel %vm419_vm5, %v418_v9, %v416_v10  ;;  %v470_v21 = vld [vmem:[#allocation2] sm:$0xff] }
  0xde   : > { %389 = vst [vmem:[#allocation2 + $0x20] sm:$0xf0] %v385_v7  ;;  %390 = vst [vmem:[#allocation2 + $0x28] sm:$0xf0] %v386_v8  ;;  %v435_v13 = vmul.f32 %v428_v2, %v420_v11  ;;  %v436_v14 = vmul.f32 %v432_v3, %v421_v12  ;;  %v471_v18 = vld [vmem:[#allocation2 + $0x8] sm:$0xff] }
  0xdf   : > { %v473_v20 = vld [vmem:[#allocation2 + $0x18] sm:$0xff]  ;;  %v472_v22 = vld [vmem:[#allocation2 + $0x10] sm:$0xff] }
  0xe0   : > { %v439_v23 = vrot.slane %v435_v13, 4  ;;  %v440_v24 = vrot.slane %v436_v14, 4  ;;  %v394_v25 = vpop.permute.xlu1 %393  ;;  %v392_v26 = vpop.permute.xlu0 %391  ;;  %v696_v27 = vpack.c.bf16 %v473_v20, %v471_v18  ;;  %v698_v28 = vpack.c.bf16 %v472_v22, %v470_v21 }
  0xe1   : > { %v396_v29 = vsel %vm395_vm6, %v392_v26, %v394_v25  ;;  %v397_v30 = vsel %vm395_vm6, %v394_v25, %v392_v26 }
  0xe2   : > { %443 = vst [vmem:[#allocation2 + $0x30] sm:$0xf0] %v439_v23  ;;  %444 = vst [vmem:[#allocation2 + $0x38] sm:$0xf0] %v440_v24  ;;  %v411_v31 = vmul.f32 %v404_v16, %v396_v29  ;;  %v412_v32 = vmul.f32 %v408_v17, %v397_v30  ;;  %697 = vmatprep.subr.bf16.mxu0 %v696_v27 }
  0xe3   : > { %699 = vmatpush1.bf16.msra.mxu0 %v698_v28 }
  0xe4   : > { %413 = vst [vmem:[#allocation2 + $0x30] sm:$0xf] %v411_v31  ;;  %414 = vst [vmem:[#allocation2 + $0x38] sm:$0xf] %v412_v32  ;;  %v448_v35 = vpop.permute.xlu1 %447  ;;  %v446_v36 = vpop.permute.xlu0 %445 }
  0xe5   : > { %v450_v37 = vsel %vm449_vm7, %v446_v36, %v448_v35  ;;  %v451_v38 = vsel %vm449_vm7, %v448_v35, %v446_v36  ;;  %v475_v15 = vld [vmem:[#allocation2 + $0x28] sm:$0xff]  ;;  %v474_v42 = vld [vmem:[#allocation2 + $0x20] sm:$0xff] }
  0xe6   : > { %v465_v39 = vmul.f32 %v458_v33, %v450_v37  ;;  %v466_v40 = vmul.f32 %v462_v34, %v451_v38 }
  0xe8   : > { %467 = vst [vmem:[#allocation2 + $0x40] sm:$0xf] %v465_v39  ;;  %468 = vst [vmem:[#allocation2 + $0x48] sm:$0xf] %v466_v40 }
  0xeb   : > { %v477_v41 = vld [vmem:[#allocation2 + $0x38] sm:$0xff]  ;;  %v476_v43 = vld [vmem:[#allocation2 + $0x30] sm:$0xff] }
  0xec   : > { %v700_v44 = vpack.c.bf16 %v477_v41, %v475_v15  ;;  %v702_v45 = vpack.c.bf16 %v476_v43, %v474_v42 }
  0xee   : > { %701 = vmatprep.subr.bf16.mxu0 %v700_v44 }
  0xef   : > { %703 = vmatpush1.bf16.msra.mxu0 %v702_v45  ;;  %v479_v4 = vld [vmem:[#allocation2 + $0x48] sm:$0xf]  ;;  %v478_v5 = vld [vmem:[#allocation2 + $0x40] sm:$0xf] }
  0xf0   : > { %686 = vmatprep.subr.msk.mxu0 %vm490_vm8, %v479_v4 }
  0xf3   : > { %687 = vmatpush1.msk.msra.mxu0 %vm490_vm8, %v478_v5 }
  0xf4   : > { %688 = vmatmul.mubr.msk.f32.vlgmr.msra.gmra.mrb[0].mxu0 %vm486_vm9, %v469_v46 }
  0xf5   : > { %v484_v47 = vpop.permute.xlu0 %483 }
 0x1c7   : > { %v563_v48 = vpop.f32.mrb[0].mxu0 }
 0x1c8   : > { %v564_v49 = vadd.f32 %v563_v48, %v484_v47  ;;  %v565_v50 = vpop.f32.mrb[1].mxu0 }
 0x1c9   : > { %v566_v51 = vadd.f32 %v565_v50, %v484_v47 }
 0x1ca   : > { %v570_v52 = vmul.f32 0.70710677, %v564_v49  ;;  %v568_v56 = vmul.f32 0.5, %v564_v49 }
 0x1cb   : > { %v571_v53 = vmul.f32 0.70710677, %v566_v51  ;;  %v569_v58 = vmul.f32 0.5, %v566_v51 }
 0x1cc   : > { %775 = verf.f32 %v570_v52 }
 0x1cd   : > { %777 = verf.f32 %v571_v53 }
 0x1d6   : > { %v776_v54 = vpop.eup %775 }
 0x1d7   : > { %v778_v55 = vpop.eup %777  ;;  %v574_v57 = vadd.f32 1.0, %v776_v54 }
 0x1d8   : > { %v575_v59 = vadd.f32 1.0, %v778_v55 }
 0x1d9   : > { %v576_v60 = vmul.f32 %v574_v57, %v568_v56 }
 0x1da   : > { %v577_v61 = vmul.f32 %v575_v59, %v569_v58 }
 0x1db   : > { %578 = vst [vmem:[%s228_s12] sm:$0xff] %v576_v60 }
 0x1dc   : > { %579 = vst [vmem:[%s228_s12 + $0x8] sm:$0xff] %v577_v61 }
 0x1dd   : > { %850 = shalt.err (!%p847_p7)
}
 0x1de   : > { %s851_s25 = scalar_lea.hbm %s1156_s21, 256  ;;  %s855_s5 = scalar_lea.hbm %s1204_s4, 512 }
 0x1df   : > { %p852_p9 = scmp.ne.s32.totalorder %s1156_s21, %s851_s25  ;;  %p856_p0 = scmp.lt.u32.totalorder %s1156_s21, %s1204_s4 }
 0x1e0   : > { %p857_p1 = scmp.lt.u32.totalorder %s855_s5, %s851_s25  ;;  %p859_p4 = scmp.lt.u32.totalorder %s851_s25, %s1156_s21 }
 0x1e1   : > { %p853_p2 = pnand %p852_p9, %p1040_p12 }
 0x1e2   : > { %p858_p11 = por %p857_p1, %p856_p0 }
 0x1e3   : > { %p854_p5 = pneg %p853_p2 }
 0x1e4   : > { %p860_p6 = por %p859_p4, %p858_p11 }
 0x1e6   : > { %p861_p8 = pnand %p860_p6, %p854_p5 }
 0x1e8   : > { %864 = shalt.err (!%p861_p8)
}
 0x1e9   : > { %710 = dma.vmem_to_hbm [thread:$0]  (%p1040_p12), %s1158_s13, 256, %s1156_s21, %s581_s28  }
 0x1ea PF: > { %s607_s8 = sand.u32 1, %s895_s15   ;;  %p1219_p10 = scmp.ne.s32.totalorder %s1209_s22, 0 }
 0x1eb   : > { %p1220_p13 = scmp.ge.s32.totalorder %s907_s18, 2  ;;  %s608_s11 = scalar_lea.sflag [#allocation5], %s607_s8 }
 0x1ed   : > { %p721_p3 = pnand %p1220_p13, %p1219_p10 }
 0x1ef   : > { %890 = dma.done.wait (!%p721_p3), %s608_s11, 256  }
 0x1f0   : > { %892 = vsyncadd (!%p721_p3), %s608_s11, 4294967040  ;;  %p18_p7 = scmp.ge.s32.totalorder %s1005_s27, 4   ;;  %s1221_s15 = smov %s899_s16 }
 0x1f1   : > { %s1222_s16 = smov %s903_s17  ;;  %s1223_s17 = smov %s1036_s24 }
 0x1f2   : > { %s1224_s18 = smov %s1005_s27  ;;  %20 = sbr.rel (!%p18_p7) target bundleno = 6 (0x6), region = 93 }
 0x1f9   :  { %613 = vsyncpa [#allocation4], 1 }
 0x1fa   :  { %615 = vsyncpa [#allocation4 + $0x1], 1 }
 0x1fb   :  { %616 = vsyncpa [#allocation7], 1 }
 0x1fc   :  { %617 = vsyncpa [#allocation5], 1 }
 0x1fd   :  { %619 = vsyncpa [#allocation5 + $0x1], 1 }

</bundles_post_ra>
